<compile_context>
chip_gen: v7x
topology: tpu7x:2x2x1
jax: 0.10.0
libtpu: 0.0.40
codegen_flags: <defaults>
</compile_context>

<pallas_src>
import functools

import numpy as np

import jax
import jax.numpy as jnp
from jax import lax
from jax.experimental import pallas as pl
from jax.experimental.pallas import tpu as pltpu


def _vmem_capacity_bytes() -> int:
    """Physical VMEM per TensorCore (128 MiB v5e/v6e, 64 MiB v7x)."""
    try:
        cap = getattr(pltpu.get_tpu_info(), "vmem_capacity_bytes", None)
        if cap:
            return int(cap)
    except Exception:
        pass
    return 64 * 1024 * 1024  # conservative fallback (v7x-sized)


def _plan_width(W: int, r: int):
    """Choose (Wp, Wc): (possibly padded) width and lane chunk.

    Wc == 128 keeps the scatter-matmul contraction at one MXU K tile on every
    generation and makes every store width/offset a multiple of 128 lanes.
    Awkward widths are padded (wrapper slices the pad off) rather than falling
    back to Wc == W, which would grow S to r^2 * W^2 elements.
    """
    if W <= 128:
        return W, W
    if W % 128 == 0:
        return W, 128
    for d in range(256, 63, -1):          # decent divisor keeps MXU K >= 64
        if W % d == 0:
            return W, d
    Wp = -(-W // 128) * 128               # pad to next multiple of 128
    return Wp, 128


def _plan_blocks(C: int, H: int, Wp: int, r: int, itemsize: int, live_budget: int):
    """(Cb, Hb): channel / row block sizes whose live (single-buffered) in+out
    blocks fit `live_budget` bytes.  Hb bounds the working set for large
    images; Cb amortizes the ~0.35 us per-grid-step overhead for small ones."""
    per_row = 2 * r * r * Wp * itemsize        # in + out bytes per (channel, input row)
    hb_cands = [d for d in range(8, H + 1, 8) if H % d == 0] or [H]
    fitting = [d for d in hb_cands if d * per_row <= live_budget]
    Hb = max(fitting) if fitting else min(hb_cands)
    per_chan = Hb * per_row
    cb_cap = int(max(1, min(64, live_budget // per_chan)))
    Cb = max(d for d in range(1, min(C, cb_cap) + 1) if C % d == 0)
    return Cb, Hb


def _scatter_dot(x, s):
    """Exact x @ s for a 0/1 bf16 scatter matrix s (one 1 per output column)."""
    if x.dtype == jnp.bfloat16:
        # Single DEFAULT-precision MXU pass; x*1.0 accumulated in f32 is exact.
        return jnp.dot(x, s, preferred_element_type=jnp.float32)
    # f32 (or other float upcast to f32): exact 3-way bf16 split, 3 DEFAULT passes.
    xf = x.astype(jnp.float32)
    hi = xf.astype(jnp.bfloat16)
    r1 = xf - hi.astype(jnp.float32)
    mid = r1.astype(jnp.bfloat16)
    lo = (r1 - mid.astype(jnp.float32)).astype(jnp.bfloat16)
    return (jnp.dot(hi, s, preferred_element_type=jnp.float32)
            + jnp.dot(mid, s, preferred_element_type=jnp.float32)
            + jnp.dot(lo, s, preferred_element_type=jnp.float32))


def _make_pixel_shuffle_kernel(r: int, Wp: int, Wc: int, Cb: int):
    """Kernel body for one (batch, channel-block, row-block) grid point."""
    M = Wp // Wc
    rWc = r * Wc

    def kernel(x_ref, s_ref, o_ref):
        # x_ref: (1, Cb, r*r, Hb, Wp)   input planes, lane dim = Wp (dense)
        # s_ref: (r, Wc, r*Wc)          bf16 0/1 scatter matrices, S[j][w, w*r+j] = 1
        # o_ref: (1, Cb, Hb, r*Wp*r)    lane-dense output super-rows
        def emit(c):
            for i in range(r):                 # static: r is small
                for m in range(M):             # static: few lane chunks
                    lo = m * Wc
                    acc = _scatter_dot(x_ref[0, c, i * r, :, lo:lo + Wc], s_ref[0])
                    for j in range(1, r):
                        acc = acc + _scatter_dot(
                            x_ref[0, c, i * r + j, :, lo:lo + Wc], s_ref[j])
                    # Column i*Wp*r + w*r + j of the super-row becomes the final
                    # out[..., h*r + i, w*r + j].  start and rWc are multiples of
                    # 128 whenever Wc % 128 == 0 -> unmasked, wide vst.
                    start = i * (Wp * r) + m * rWc
                    o_ref[0, c, :, start:start + rWc] = acc.astype(o_ref.dtype)

        if Cb <= 4:
            for c in range(Cb):                # small block: static unroll
                emit(c)
        else:
            def body(c, carry):                # large block: bounded live ranges
                emit(c)
                return carry
            lax.fori_loop(0, Cb, body, None, unroll=Cb <= 8)

    return kernel


@functools.partial(jax.jit, static_argnums=(1,))
def pixel_shuffle_pallas(x, upscale_factor: int):
    """Pallas TPU implementation of torch.nn.functional.pixel_shuffle (NCHW)."""
    r = int(upscale_factor)
    N, Cin, H, W = x.shape
    if Cin % (r * r) != 0:
        raise ValueError("channels must be divisible by upscale_factor**2")
    # TODO(synk): integer dtypes need a select/DMA-based interleave; the MXU
    # scatter path below is only exact for floating-point inputs.
    if not jnp.issubdtype(x.dtype, jnp.floating):
        raise NotImplementedError("pixel_shuffle_pallas: floating dtypes only")

    C = Cin // (r * r)
    itemsize = x.dtype.itemsize

    Wp, Wc = _plan_width(W, r)
    capacity = _vmem_capacity_bytes()
    live_budget = max(2 << 20, capacity // 4)      # x2 double-buffering <= capacity/2
    Cb, Hb = _plan_blocks(C, H, Wp, r, itemsize, live_budget)

    # Metadata-only view: split channels, keep W on the lane axis; pad awkward W.
    xv = x.reshape(N, C, r * r, H, W)
    if Wp != W:
        xv = jnp.pad(xv, ((0, 0),) * 4 + ((0, Wp - W),))

    # bf16 (exact for 0/1) scatter matrices implementing the lane interleave.
    S_np = np.zeros((r, Wc, r * Wc), dtype=np.float32)
    w_idx = np.arange(Wc)
    for j in range(r):
        S_np[j, w_idx, w_idx * r + j] = 1.0
    S = jnp.asarray(S_np, dtype=jnp.bfloat16)

    block_bytes = (Cb * r * r * Hb * Wp + Cb * Hb * r * Wp * r) * itemsize
    s_bytes = S.size * S.dtype.itemsize
    vmem_limit = int(min(3 * capacity // 4,
                         max(32 << 20, 2 * block_bytes + 2 * s_bytes + (4 << 20))))

    kernel = _make_pixel_shuffle_kernel(r, Wp, Wc, Cb)

    out = pl.pallas_call(
        kernel,
        out_shape=jax.ShapeDtypeStruct((N, C, H, r * Wp * r), x.dtype),
        grid=(N, C // Cb, H // Hb),
        in_specs=[
            pl.BlockSpec((1, Cb, r * r, Hb, Wp), lambda n, c, h: (n, c, 0, h, 0)),
            # Constant block index: S is fetched once and stays VMEM-resident.
            pl.BlockSpec((r, Wc, r * Wc), lambda n, c, h: (0, 0, 0)),
        ],
        out_specs=pl.BlockSpec((1, Cb, Hb, r * Wp * r), lambda n, c, h: (n, c, h, 0)),
        compiler_params=pltpu.CompilerParams(
            dimension_semantics=("parallel", "parallel", "parallel"),
            vmem_limit_bytes=vmem_limit),
    )(xv, S)

    # Metadata-only merge to NCHW: (N, C, H, r*Wp*r) -> (N, C, H*r, Wp*r).
    out = out.reshape(N, C, H * r, Wp * r)
    if Wp != W:
        out = out[..., : W * r]                 # drop the width padding
    return out


class PixelShuffle:
    """Mirror of the PyTorch module (no parameters)."""

    def __init__(self, upscale_factor: int):
        self.upscale_factor = upscale_factor

    def __call__(self, x):
        return pixel_shuffle_pallas(x, self.upscale_factor)


def pixel_shuffle_ref(x, r):
    """Pure-JAX reference (verification only)."""
    N, Cin, H, W = x.shape
    C = Cin // (r * r)
    y = x.reshape(N, C, r, r, H, W)
    y = jnp.transpose(y, (0, 1, 4, 2, 5, 3))
    return y.reshape(N, C, H * r, W * r)


def _check(x, r):
    y = jax.block_until_ready(PixelShuffle(r)(x))
    y_ref = pixel_shuffle_ref(x, r)
    assert y.shape == y_ref.shape, (y.shape, y_ref.shape)
    assert y.dtype == x.dtype, (y.dtype, x.dtype)
    assert bool(jnp.allclose(y.astype(jnp.float32), y_ref.astype(jnp.float32),
                             rtol=1e-6, atol=1e-6)), "mismatch vs. reference"
    return y


if __name__ == "__main__":
    key = jax.random.PRNGKey(0)
    k0, k1, k2, k3 = jax.random.split(key, 4)

    # (N, C*r*r, H, W) = (2, 8, 16, 16), r=2 -> (2, 2, 32, 32): f32 exact-split path.
    x0 = jax.random.normal(k0, (2, 8, 16, 16), dtype=jnp.float32)
    y0 = _check(x0, 2)
    assert y0.shape == (2, 2, 32, 32), y0.shape

    # Same shape in bf16: single DEFAULT-precision MXU pass.
    x1 = jax.random.normal(k1, (2, 8, 16, 16), dtype=jnp.bfloat16)
    _check(x1, 2)

    # r=4 with W=256: multi-chunk (Wc=128), 128-lane-aligned dense stores.
    x2 = jax.random.normal(k2, (1, 16, 8, 256), dtype=jnp.float32)
    y2 = _check(x2, 4)
    assert y2.shape == (1, 1, 32, 1024), y2.shape

    # Awkward (prime) W=131: wrapper pads to 256 instead of a giant S matrix.
    x3 = jax.random.normal(k3, (1, 4, 8, 131), dtype=jnp.float32)
    y3 = _check(x3, 2)
    assert y3.shape == (1, 1, 16, 262), y3.shape

    print("KERNEL_OK")
</pallas_src>

<mosaic_0001>
module attributes {stable_mosaic.version = 11 : i64} {
  func.func @kernel(%arg0: i32, %arg1: i32, %arg2: i32, %arg3: memref<1x2x4x16x16xf32, #tpu.memory_space<vmem>>, %arg4: memref<2x16x32xbf16, #tpu.memory_space<vmem>>, %arg5: memref<1x2x16x64xf32, #tpu.memory_space<vmem>>) attributes {dimension_semantics = [#tpu.dimension_semantics<parallel>, #tpu.dimension_semantics<parallel>, #tpu.dimension_semantics<parallel>], iteration_bounds = array<i64: 2, 1, 1>, scalar_prefetch = 0 : i64, scratch_operands = 0 : i64, tpu.core_type = #tpu.core_type<tc>, window_params = [{transform_indices = @transform_0, window_bounds = array<i64: 1, 2, 4, 16, 16>}, {pipeline_mode = #tpu.pipeline_mode<synchronous>, transform_indices = @transform_1, window_bounds = array<i64: 2, 16, 32>}, {transform_indices = @transform_2, window_bounds = array<i64: 1, 2, 16, 64>}]} {
    %c0 = arith.constant 0 : index
    %c0_0 = arith.constant 0 : index
    %c0_1 = arith.constant 0 : index
    %c0_2 = arith.constant 0 : index
    %c0_3 = arith.constant 0 : index
    %0 = vector.load %arg3[%c0, %c0_0, %c0_1, %c0_2, %c0_3] : memref<1x2x4x16x16xf32, #tpu.memory_space<vmem>>, vector<1x1x1x16x16xf32>
    %1 = vector.shape_cast %0 : vector<1x1x1x16x16xf32> to vector<16x16xf32>
    %c0_4 = arith.constant 0 : index
    %c0_5 = arith.constant 0 : index
    %c0_6 = arith.constant 0 : index
    %2 = vector.load %arg4[%c0_4, %c0_5, %c0_6] : memref<2x16x32xbf16, #tpu.memory_space<vmem>>, vector<1x16x32xbf16>
    %3 = vector.shape_cast %2 : vector<1x16x32xbf16> to vector<16x32xbf16>
    %4 = arith.truncf %1 : vector<16x16xf32> to vector<16x16xbf16>
    %5 = arith.extf %4 : vector<16x16xbf16> to vector<16x16xf32>
    %6 = arith.subf %1, %5 : vector<16x16xf32>
    %7 = arith.truncf %6 : vector<16x16xf32> to vector<16x16xbf16>
    %8 = arith.extf %7 : vector<16x16xbf16> to vector<16x16xf32>
    %9 = arith.subf %6, %8 : vector<16x16xf32>
    %10 = arith.truncf %9 : vector<16x16xf32> to vector<16x16xbf16>
    %cst = arith.constant dense<0.000000e+00> : vector<16x32xf32>
    %11 = tpu.matmul %4, %3, %cst {dimension_numbers = #tpu.dot_dimension_numbers<[1], [0], [0], [1], [0, 0, 1, 1], [], []>} : vector<16x16xbf16>, vector<16x32xbf16>, vector<16x32xf32> -> vector<16x32xf32>
    %cst_7 = arith.constant dense<0.000000e+00> : vector<16x32xf32>
    %12 = tpu.matmul %7, %3, %cst_7 {dimension_numbers = #tpu.dot_dimension_numbers<[1], [0], [0], [1], [0, 0, 1, 1], [], []>} : vector<16x16xbf16>, vector<16x32xbf16>, vector<16x32xf32> -> vector<16x32xf32>
    %13 = arith.addf %11, %12 : vector<16x32xf32>
    %cst_8 = arith.constant dense<0.000000e+00> : vector<16x32xf32>
    %14 = tpu.matmul %10, %3, %cst_8 {dimension_numbers = #tpu.dot_dimension_numbers<[1], [0], [0], [1], [0, 0, 1, 1], [], []>} : vector<16x16xbf16>, vector<16x32xbf16>, vector<16x32xf32> -> vector<16x32xf32>
    %15 = arith.addf %13, %14 : vector<16x32xf32>
    %c0_9 = arith.constant 0 : index
    %c0_10 = arith.constant 0 : index
    %c1 = arith.constant 1 : index
    %c0_11 = arith.constant 0 : index
    %c0_12 = arith.constant 0 : index
    %16 = vector.load %arg3[%c0_9, %c0_10, %c1, %c0_11, %c0_12] : memref<1x2x4x16x16xf32, #tpu.memory_space<vmem>>, vector<1x1x1x16x16xf32>
    %17 = vector.shape_cast %16 : vector<1x1x1x16x16xf32> to vector<16x16xf32>
    %c1_13 = arith.constant 1 : index
    %c0_14 = arith.constant 0 : index
    %c0_15 = arith.constant 0 : index
    %18 = vector.load %arg4[%c1_13, %c0_14, %c0_15] : memref<2x16x32xbf16, #tpu.memory_space<vmem>>, vector<1x16x32xbf16>
    %19 = vector.shape_cast %18 : vector<1x16x32xbf16> to vector<16x32xbf16>
    %20 = arith.truncf %17 : vector<16x16xf32> to vector<16x16xbf16>
    %21 = arith.extf %20 : vector<16x16xbf16> to vector<16x16xf32>
    %22 = arith.subf %17, %21 : vector<16x16xf32>
    %23 = arith.truncf %22 : vector<16x16xf32> to vector<16x16xbf16>
    %24 = arith.extf %23 : vector<16x16xbf16> to vector<16x16xf32>
    %25 = arith.subf %22, %24 : vector<16x16xf32>
    %26 = arith.truncf %25 : vector<16x16xf32> to vector<16x16xbf16>
    %cst_16 = arith.constant dense<0.000000e+00> : vector<16x32xf32>
    %27 = tpu.matmul %20, %19, %cst_16 {dimension_numbers = #tpu.dot_dimension_numbers<[1], [0], [0], [1], [0, 0, 1, 1], [], []>} : vector<16x16xbf16>, vector<16x32xbf16>, vector<16x32xf32> -> vector<16x32xf32>
    %cst_17 = arith.constant dense<0.000000e+00> : vector<16x32xf32>
    %28 = tpu.matmul %23, %19, %cst_17 {dimension_numbers = #tpu.dot_dimension_numbers<[1], [0], [0], [1], [0, 0, 1, 1], [], []>} : vector<16x16xbf16>, vector<16x32xbf16>, vector<16x32xf32> -> vector<16x32xf32>
    %29 = arith.addf %27, %28 : vector<16x32xf32>
    %cst_18 = arith.constant dense<0.000000e+00> : vector<16x32xf32>
    %30 = tpu.matmul %26, %19, %cst_18 {dimension_numbers = #tpu.dot_dimension_numbers<[1], [0], [0], [1], [0, 0, 1, 1], [], []>} : vector<16x16xbf16>, vector<16x32xbf16>, vector<16x32xf32> -> vector<16x32xf32>
    %31 = arith.addf %29, %30 : vector<16x32xf32>
    %32 = arith.addf %15, %31 : vector<16x32xf32>
    %c0_19 = arith.constant 0 : index
    %c0_20 = arith.constant 0 : index
    %c0_21 = arith.constant 0 : index
    %c0_22 = arith.constant 0 : index
    %33 = vector.load %arg5[%c0_19, %c0_20, %c0_21, %c0_22] : memref<1x2x16x64xf32, #tpu.memory_space<vmem>>, vector<1x1x16x32xf32>
    %34 = vector.shape_cast %33 : vector<1x1x16x32xf32> to vector<16x32xf32>
    %35 = vector.shape_cast %32 : vector<16x32xf32> to vector<1x1x16x32xf32>
    tpu.vector_store %arg5[%c0_19, %c0_20, %c0_21, %c0_22], %35 {strides = array<i32>} : memref<1x2x16x64xf32, #tpu.memory_space<vmem>>, vector<1x1x16x32xf32>,
    %c0_23 = arith.constant 0 : index
    %c0_24 = arith.constant 0 : index
    %c2 = arith.constant 2 : index
    %c0_25 = arith.constant 0 : index
    %c0_26 = arith.constant 0 : index
    %36 = vector.load %arg3[%c0_23, %c0_24, %c2, %c0_25, %c0_26] : memref<1x2x4x16x16xf32, #tpu.memory_space<vmem>>, vector<1x1x1x16x16xf32>
    %37 = vector.shape_cast %36 : vector<1x1x1x16x16xf32> to vector<16x16xf32>
    %c0_27 = arith.constant 0 : index
    %c0_28 = arith.constant 0 : index
    %c0_29 = arith.constant 0 : index
    %38 = vector.load %arg4[%c0_27, %c0_28, %c0_29] : memref<2x16x32xbf16, #tpu.memory_space<vmem>>, vector<1x16x32xbf16>
    %39 = vector.shape_cast %38 : vector<1x16x32xbf16> to vector<16x32xbf16>
    %40 = arith.truncf %37 : vector<16x16xf32> to vector<16x16xbf16>
    %41 = arith.extf %40 : vector<16x16xbf16> to vector<16x16xf32>
    %42 = arith.subf %37, %41 : vector<16x16xf32>
    %43 = arith.truncf %42 : vector<16x16xf32> to vector<16x16xbf16>
    %44 = arith.extf %43 : vector<16x16xbf16> to vector<16x16xf32>
    %45 = arith.subf %42, %44 : vector<16x16xf32>
    %46 = arith.truncf %45 : vector<16x16xf32> to vector<16x16xbf16>
    %cst_30 = arith.constant dense<0.000000e+00> : vector<16x32xf32>
    %47 = tpu.matmul %40, %39, %cst_30 {dimension_numbers = #tpu.dot_dimension_numbers<[1], [0], [0], [1], [0, 0, 1, 1], [], []>} : vector<16x16xbf16>, vector<16x32xbf16>, vector<16x32xf32> -> vector<16x32xf32>
    %cst_31 = arith.constant dense<0.000000e+00> : vector<16x32xf32>
    %48 = tpu.matmul %43, %39, %cst_31 {dimension_numbers = #tpu.dot_dimension_numbers<[1], [0], [0], [1], [0, 0, 1, 1], [], []>} : vector<16x16xbf16>, vector<16x32xbf16>, vector<16x32xf32> -> vector<16x32xf32>
    %49 = arith.addf %47, %48 : vector<16x32xf32>
    %cst_32 = arith.constant dense<0.000000e+00> : vector<16x32xf32>
    %50 = tpu.matmul %46, %39, %cst_32 {dimension_numbers = #tpu.dot_dimension_numbers<[1], [0], [0], [1], [0, 0, 1, 1], [], []>} : vector<16x16xbf16>, vector<16x32xbf16>, vector<16x32xf32> -> vector<16x32xf32>
    %51 = arith.addf %49, %50 : vector<16x32xf32>
    %c0_33 = arith.constant 0 : index
    %c0_34 = arith.constant 0 : index
    %c3 = arith.constant 3 : index
    %c0_35 = arith.constant 0 : index
    %c0_36 = arith.constant 0 : index
    %52 = vector.load %arg3[%c0_33, %c0_34, %c3, %c0_35, %c0_36] : memref<1x2x4x16x16xf32, #tpu.memory_space<vmem>>, vector<1x1x1x16x16xf32>
    %53 = vector.shape_cast %52 : vector<1x1x1x16x16xf32> to vector<16x16xf32>
    %c1_37 = arith.constant 1 : index
    %c0_38 = arith.constant 0 : index
    %c0_39 = arith.constant 0 : index
    %54 = vector.load %arg4[%c1_37, %c0_38, %c0_39] : memref<2x16x32xbf16, #tpu.memory_space<vmem>>, vector<1x16x32xbf16>
    %55 = vector.shape_cast %54 : vector<1x16x32xbf16> to vector<16x32xbf16>
    %56 = arith.truncf %53 : vector<16x16xf32> to vector<16x16xbf16>
    %57 = arith.extf %56 : vector<16x16xbf16> to vector<16x16xf32>
    %58 = arith.subf %53, %57 : vector<16x16xf32>
    %59 = arith.truncf %58 : vector<16x16xf32> to vector<16x16xbf16>
    %60 = arith.extf %59 : vector<16x16xbf16> to vector<16x16xf32>
    %61 = arith.subf %58, %60 : vector<16x16xf32>
    %62 = arith.truncf %61 : vector<16x16xf32> to vector<16x16xbf16>
    %cst_40 = arith.constant dense<0.000000e+00> : vector<16x32xf32>
    %63 = tpu.matmul %56, %55, %cst_40 {dimension_numbers = #tpu.dot_dimension_numbers<[1], [0], [0], [1], [0, 0, 1, 1], [], []>} : vector<16x16xbf16>, vector<16x32xbf16>, vector<16x32xf32> -> vector<16x32xf32>
    %cst_41 = arith.constant dense<0.000000e+00> : vector<16x32xf32>
    %64 = tpu.matmul %59, %55, %cst_41 {dimension_numbers = #tpu.dot_dimension_numbers<[1], [0], [0], [1], [0, 0, 1, 1], [], []>} : vector<16x16xbf16>, vector<16x32xbf16>, vector<16x32xf32> -> vector<16x32xf32>
    %65 = arith.addf %63, %64 : vector<16x32xf32>
    %cst_42 = arith.constant dense<0.000000e+00> : vector<16x32xf32>
    %66 = tpu.matmul %62, %55, %cst_42 {dimension_numbers = #tpu.dot_dimension_numbers<[1], [0], [0], [1], [0, 0, 1, 1], [], []>} : vector<16x16xbf16>, vector<16x32xbf16>, vector<16x32xf32> -> vector<16x32xf32>
    %67 = arith.addf %65, %66 : vector<16x32xf32>
    %68 = arith.addf %51, %67 : vector<16x32xf32>
    %c0_43 = arith.constant 0 : index
    %c0_44 = arith.constant 0 : index
    %c0_45 = arith.constant 0 : index
    %c32 = arith.constant 32 : index
    %69 = vector.load %arg5[%c0_43, %c0_44, %c0_45, %c32] : memref<1x2x16x64xf32, #tpu.memory_space<vmem>>, vector<1x1x16x32xf32>
    %70 = vector.shape_cast %69 : vector<1x1x16x32xf32> to vector<16x32xf32>
    %71 = vector.shape_cast %68 : vector<16x32xf32> to vector<1x1x16x32xf32>
    tpu.vector_store %arg5[%c0_43, %c0_44, %c0_45, %c32], %71 {strides = array<i32>} : memref<1x2x16x64xf32, #tpu.memory_space<vmem>>, vector<1x1x16x32xf32>,
    %c0_46 = arith.constant 0 : index
    %c1_47 = arith.constant 1 : index
    %c0_48 = arith.constant 0 : index
    %c0_49 = arith.constant 0 : index
    %c0_50 = arith.constant 0 : index
    %72 = vector.load %arg3[%c0_46, %c1_47, %c0_48, %c0_49, %c0_50] : memref<1x2x4x16x16xf32, #tpu.memory_space<vmem>>, vector<1x1x1x16x16xf32>
    %73 = vector.shape_cast %72 : vector<1x1x1x16x16xf32> to vector<16x16xf32>
    %c0_51 = arith.constant 0 : index
    %c0_52 = arith.constant 0 : index
    %c0_53 = arith.constant 0 : index
    %74 = vector.load %arg4[%c0_51, %c0_52, %c0_53] : memref<2x16x32xbf16, #tpu.memory_space<vmem>>, vector<1x16x32xbf16>
    %75 = vector.shape_cast %74 : vector<1x16x32xbf16> to vector<16x32xbf16>
    %76 = arith.truncf %73 : vector<16x16xf32> to vector<16x16xbf16>
    %77 = arith.extf %76 : vector<16x16xbf16> to vector<16x16xf32>
    %78 = arith.subf %73, %77 : vector<16x16xf32>
    %79 = arith.truncf %78 : vector<16x16xf32> to vector<16x16xbf16>
    %80 = arith.extf %79 : vector<16x16xbf16> to vector<16x16xf32>
    %81 = arith.subf %78, %80 : vector<16x16xf32>
    %82 = arith.truncf %81 : vector<16x16xf32> to vector<16x16xbf16>
    %cst_54 = arith.constant dense<0.000000e+00> : vector<16x32xf32>
    %83 = tpu.matmul %76, %75, %cst_54 {dimension_numbers = #tpu.dot_dimension_numbers<[1], [0], [0], [1], [0, 0, 1, 1], [], []>} : vector<16x16xbf16>, vector<16x32xbf16>, vector<16x32xf32> -> vector<16x32xf32>
    %cst_55 = arith.constant dense<0.000000e+00> : vector<16x32xf32>
    %84 = tpu.matmul %79, %75, %cst_55 {dimension_numbers = #tpu.dot_dimension_numbers<[1], [0], [0], [1], [0, 0, 1, 1], [], []>} : vector<16x16xbf16>, vector<16x32xbf16>, vector<16x32xf32> -> vector<16x32xf32>
    %85 = arith.addf %83, %84 : vector<16x32xf32>
    %cst_56 = arith.constant dense<0.000000e+00> : vector<16x32xf32>
    %86 = tpu.matmul %82, %75, %cst_56 {dimension_numbers = #tpu.dot_dimension_numbers<[1], [0], [0], [1], [0, 0, 1, 1], [], []>} : vector<16x16xbf16>, vector<16x32xbf16>, vector<16x32xf32> -> vector<16x32xf32>
    %87 = arith.addf %85, %86 : vector<16x32xf32>
    %c0_57 = arith.constant 0 : index
    %c1_58 = arith.constant 1 : index
    %c1_59 = arith.constant 1 : index
    %c0_60 = arith.constant 0 : index
    %c0_61 = arith.constant 0 : index
    %88 = vector.load %arg3[%c0_57, %c1_58, %c1_59, %c0_60, %c0_61] : memref<1x2x4x16x16xf32, #tpu.memory_space<vmem>>, vector<1x1x1x16x16xf32>
    %89 = vector.shape_cast %88 : vector<1x1x1x16x16xf32> to vector<16x16xf32>
    %c1_62 = arith.constant 1 : index
    %c0_63 = arith.constant 0 : index
    %c0_64 = arith.constant 0 : index
    %90 = vector.load %arg4[%c1_62, %c0_63, %c0_64] : memref<2x16x32xbf16, #tpu.memory_space<vmem>>, vector<1x16x32xbf16>
    %91 = vector.shape_cast %90 : vector<1x16x32xbf16> to vector<16x32xbf16>
    %92 = arith.truncf %89 : vector<16x16xf32> to vector<16x16xbf16>
    %93 = arith.extf %92 : vector<16x16xbf16> to vector<16x16xf32>
    %94 = arith.subf %89, %93 : vector<16x16xf32>
    %95 = arith.truncf %94 : vector<16x16xf32> to vector<16x16xbf16>
    %96 = arith.extf %95 : vector<16x16xbf16> to vector<16x16xf32>
    %97 = arith.subf %94, %96 : vector<16x16xf32>
    %98 = arith.truncf %97 : vector<16x16xf32> to vector<16x16xbf16>
    %cst_65 = arith.constant dense<0.000000e+00> : vector<16x32xf32>
    %99 = tpu.matmul %92, %91, %cst_65 {dimension_numbers = #tpu.dot_dimension_numbers<[1], [0], [0], [1], [0, 0, 1, 1], [], []>} : vector<16x16xbf16>, vector<16x32xbf16>, vector<16x32xf32> -> vector<16x32xf32>
    %cst_66 = arith.constant dense<0.000000e+00> : vector<16x32xf32>
    %100 = tpu.matmul %95, %91, %cst_66 {dimension_numbers = #tpu.dot_dimension_numbers<[1], [0], [0], [1], [0, 0, 1, 1], [], []>} : vector<16x16xbf16>, vector<16x32xbf16>, vector<16x32xf32> -> vector<16x32xf32>
    %101 = arith.addf %99, %100 : vector<16x32xf32>
    %cst_67 = arith.constant dense<0.000000e+00> : vector<16x32xf32>
    %102 = tpu.matmul %98, %91, %cst_67 {dimension_numbers = #tpu.dot_dimension_numbers<[1], [0], [0], [1], [0, 0, 1, 1], [], []>} : vector<16x16xbf16>, vector<16x32xbf16>, vector<16x32xf32> -> vector<16x32xf32>
    %103 = arith.addf %101, %102 : vector<16x32xf32>
    %104 = arith.addf %87, %103 : vector<16x32xf32>
    %c0_68 = arith.constant 0 : index
    %c1_69 = arith.constant 1 : index
    %c0_70 = arith.constant 0 : index
    %c0_71 = arith.constant 0 : index
    %105 = vector.load %arg5[%c0_68, %c1_69, %c0_70, %c0_71] : memref<1x2x16x64xf32, #tpu.memory_space<vmem>>, vector<1x1x16x32xf32>
    %106 = vector.shape_cast %105 : vector<1x1x16x32xf32> to vector<16x32xf32>
    %107 = vector.shape_cast %104 : vector<16x32xf32> to vector<1x1x16x32xf32>
    tpu.vector_store %arg5[%c0_68, %c1_69, %c0_70, %c0_71], %107 {strides = array<i32>} : memref<1x2x16x64xf32, #tpu.memory_space<vmem>>, vector<1x1x16x32xf32>,
    %c0_72 = arith.constant 0 : index
    %c1_73 = arith.constant 1 : index
    %c2_74 = arith.constant 2 : index
    %c0_75 = arith.constant 0 : index
    %c0_76 = arith.constant 0 : index
    %108 = vector.load %arg3[%c0_72, %c1_73, %c2_74, %c0_75, %c0_76] : memref<1x2x4x16x16xf32, #tpu.memory_space<vmem>>, vector<1x1x1x16x16xf32>
    %109 = vector.shape_cast %108 : vector<1x1x1x16x16xf32> to vector<16x16xf32>
    %c0_77 = arith.constant 0 : index
    %c0_78 = arith.constant 0 : index
    %c0_79 = arith.constant 0 : index
    %110 = vector.load %arg4[%c0_77, %c0_78, %c0_79] : memref<2x16x32xbf16, #tpu.memory_space<vmem>>, vector<1x16x32xbf16>
    %111 = vector.shape_cast %110 : vector<1x16x32xbf16> to vector<16x32xbf16>
    %112 = arith.truncf %109 : vector<16x16xf32> to vector<16x16xbf16>
    %113 = arith.extf %112 : vector<16x16xbf16> to vector<16x16xf32>
    %114 = arith.subf %109, %113 : vector<16x16xf32>
    %115 = arith.truncf %114 : vector<16x16xf32> to vector<16x16xbf16>
    %116 = arith.extf %115 : vector<16x16xbf16> to vector<16x16xf32>
    %117 = arith.subf %114, %116 : vector<16x16xf32>
    %118 = arith.truncf %117 : vector<16x16xf32> to vector<16x16xbf16>
    %cst_80 = arith.constant dense<0.000000e+00> : vector<16x32xf32>
    %119 = tpu.matmul %112, %111, %cst_80 {dimension_numbers = #tpu.dot_dimension_numbers<[1], [0], [0], [1], [0, 0, 1, 1], [], []>} : vector<16x16xbf16>, vector<16x32xbf16>, vector<16x32xf32> -> vector<16x32xf32>
    %cst_81 = arith.constant dense<0.000000e+00> : vector<16x32xf32>
    %120 = tpu.matmul %115, %111, %cst_81 {dimension_numbers = #tpu.dot_dimension_numbers<[1], [0], [0], [1], [0, 0, 1, 1], [], []>} : vector<16x16xbf16>, vector<16x32xbf16>, vector<16x32xf32> -> vector<16x32xf32>
    %121 = arith.addf %119, %120 : vector<16x32xf32>
    %cst_82 = arith.constant dense<0.000000e+00> : vector<16x32xf32>
    %122 = tpu.matmul %118, %111, %cst_82 {dimension_numbers = #tpu.dot_dimension_numbers<[1], [0], [0], [1], [0, 0, 1, 1], [], []>} : vector<16x16xbf16>, vector<16x32xbf16>, vector<16x32xf32> -> vector<16x32xf32>
    %123 = arith.addf %121, %122 : vector<16x32xf32>
    %c0_83 = arith.constant 0 : index
    %c1_84 = arith.constant 1 : index
    %c3_85 = arith.constant 3 : index
    %c0_86 = arith.constant 0 : index
    %c0_87 = arith.constant 0 : index
    %124 = vector.load %arg3[%c0_83, %c1_84, %c3_85, %c0_86, %c0_87] : memref<1x2x4x16x16xf32, #tpu.memory_space<vmem>>, vector<1x1x1x16x16xf32>
    %125 = vector.shape_cast %124 : vector<1x1x1x16x16xf32> to vector<16x16xf32>
    %c1_88 = arith.constant 1 : index
    %c0_89 = arith.constant 0 : index
    %c0_90 = arith.constant 0 : index
    %126 = vector.load %arg4[%c1_88, %c0_89, %c0_90] : memref<2x16x32xbf16, #tpu.memory_space<vmem>>, vector<1x16x32xbf16>
    %127 = vector.shape_cast %126 : vector<1x16x32xbf16> to vector<16x32xbf16>
    %128 = arith.truncf %125 : vector<16x16xf32> to vector<16x16xbf16>
    %129 = arith.extf %128 : vector<16x16xbf16> to vector<16x16xf32>
    %130 = arith.subf %125, %129 : vector<16x16xf32>
    %131 = arith.truncf %130 : vector<16x16xf32> to vector<16x16xbf16>
    %132 = arith.extf %131 : vector<16x16xbf16> to vector<16x16xf32>
    %133 = arith.subf %130, %132 : vector<16x16xf32>
    %134 = arith.truncf %133 : vector<16x16xf32> to vector<16x16xbf16>
    %cst_91 = arith.constant dense<0.000000e+00> : vector<16x32xf32>
    %135 = tpu.matmul %128, %127, %cst_91 {dimension_numbers = #tpu.dot_dimension_numbers<[1], [0], [0], [1], [0, 0, 1, 1], [], []>} : vector<16x16xbf16>, vector<16x32xbf16>, vector<16x32xf32> -> vector<16x32xf32>
    %cst_92 = arith.constant dense<0.000000e+00> : vector<16x32xf32>
    %136 = tpu.matmul %131, %127, %cst_92 {dimension_numbers = #tpu.dot_dimension_numbers<[1], [0], [0], [1], [0, 0, 1, 1], [], []>} : vector<16x16xbf16>, vector<16x32xbf16>, vector<16x32xf32> -> vector<16x32xf32>
    %137 = arith.addf %135, %136 : vector<16x32xf32>
    %cst_93 = arith.constant dense<0.000000e+00> : vector<16x32xf32>
    %138 = tpu.matmul %134, %127, %cst_93 {dimension_numbers = #tpu.dot_dimension_numbers<[1], [0], [0], [1], [0, 0, 1, 1], [], []>} : vector<16x16xbf16>, vector<16x32xbf16>, vector<16x32xf32> -> vector<16x32xf32>
    %139 = arith.addf %137, %138 : vector<16x32xf32>
    %140 = arith.addf %123, %139 : vector<16x32xf32>
    %c0_94 = arith.constant 0 : index
    %c1_95 = arith.constant 1 : index
    %c0_96 = arith.constant 0 : index
    %c32_97 = arith.constant 32 : index
    %141 = vector.load %arg5[%c0_94, %c1_95, %c0_96, %c32_97] : memref<1x2x16x64xf32, #tpu.memory_space<vmem>>, vector<1x1x16x32xf32>
    %142 = vector.shape_cast %141 : vector<1x1x16x32xf32> to vector<16x32xf32>
    %143 = vector.shape_cast %140 : vector<16x32xf32> to vector<1x1x16x32xf32>
    tpu.vector_store %arg5[%c0_94, %c1_95, %c0_96, %c32_97], %143 {strides = array<i32>} : memref<1x2x16x64xf32, #tpu.memory_space<vmem>>, vector<1x1x16x32xf32>,
    return
  }
  func.func @transform_0(%arg0: i32, %arg1: i32, %arg2: i32) -> (i32, i32, i32, i32, i32) {
    %c0_i32 = arith.constant 0 : i32
    %c0_i32_0 = arith.constant 0 : i32
    %c0_i32_1 = arith.constant 0 : i32
    return %arg0, %arg1, %c0_i32, %arg2, %c0_i32_0 : i32, i32, i32, i32, i32
  }
  func.func @transform_1(%arg0: i32, %arg1: i32, %arg2: i32) -> (i32, i32, i32) {
    %c0_i32 = arith.constant 0 : i32
    %c0_i32_0 = arith.constant 0 : i32
    %c0_i32_1 = arith.constant 0 : i32
    %c0_i32_2 = arith.constant 0 : i32
    return %c0_i32, %c0_i32_0, %c0_i32_1 : i32, i32, i32
  }
  func.func @transform_2(%arg0: i32, %arg1: i32, %arg2: i32) -> (i32, i32, i32, i32) {
    %c0_i32 = arith.constant 0 : i32
    %c0_i32_0 = arith.constant 0 : i32
    return %arg0, %arg1, %arg2, %c0_i32 : i32, i32, i32, i32
  }
}

</mosaic_0001>

<bundles_post_ra>
// kernel: pixel_shuffle_pallas.1
= control target key start
LH: loop header
LB: loop body
LE: loop exit
PB: predicated region body
PF: predicated region fallthrough
CT: control target
= control target key end

     0   :  { %7 = vsyncpa [#allocation3], 0  ;;  %s2491_s0 = inlined_call_operand.hbm [shape: f32[2,2,4,16,16], index: 0, kind: input, shape index: {}]   ;;  %s2492_s1 = inlined_call_operand.hbm [shape: bf16[2,16,32], index: 1, kind: input, shape index: {}]   ;;  %s2493_s2 = inlined_call_operand.vmem [shape: f32[2,2,16,64], index: 2, kind: output, shape index: {}]  }
   0x1   :  { %9 = vsyncpa [#allocation3 + $0x1], 0 }
   0x2   :  { %10 = vsyncpa [#allocation5], 0  ;;  %s2205_s9 = smov 0   ;;  %s2207_s10 = smov 0  }
   0x3   :  { %s2209_s11 = smov 0   ;;  %s2211_s12 = smov 0  }
   0x4   :  { %s2213_s13 = smov 0   ;;  %s2215_s14 = smov 0  }
   0x5 LB: > { %s1647_s15 = sadd.s32 4294967295, %s2179_s14   ;;  %p59_p0 = scmp.ne.s32.totalorder %s2163_s10, %s2159_s9  ;;  %s2179_s14 = sphi %s2215_s14, %s16_s14   ;;  %s2175_s13 = sphi %s2213_s13, %s2510_s13   ;;  %s2171_s12 = sphi %s2211_s12, %s2509_s12   ;;  %s2167_s11 = sphi %s2209_s11, %s2508_s11   ;;  %s2163_s10 = sphi %s2207_s10, %s2507_s10   ;;  %s2159_s9 = sphi %s2205_s9, %s2506_s9  }
   0x6   : > { %p2235_p1 = scmp.eq.s32.totalorder %s1647_s15, 0  ;;  %p1649_p2 = scmp.ge.s32.totalorder %s2179_s14, 1 }
   0x7   : > { %p121_p3 = scmp.lt.s32.totalorder %s2179_s14, 3  ;;  %s2181_s19 = smov [#allocation4]  }
   0x8   : > { %s2498_s16 = scalar_select %p2235_p1, 1, 0 }
   0x9   : > { %p2243_p4 = por %p2235_p1, %p59_p0  ;;  %p2247_p5 = pnand %p1649_p2, %p121_p3 }
   0xa   : > { %s133_s20 = sshll.u32 %s2181_s19, 4  ;;  %s35_s22 = sadd.s32 1, %s2175_s13  ;;  %s134_s20 = int_to_ptr.vmem [resolvable:$true] %s133_s20 }
   0xb   : > { %s2499_s17 = scalar_select %p2243_p4, 1, 0 }
   0xc   : > { %s2500_s18 = scalar_select %p2247_p5, 1, 0 }
   0xd   : > { %p1992_p6 = pneg %p2247_p5  ;;  %s2067_s25 = scalar_lea.hbm %s2492_s1, 256 }
   0xe   : > { %p2068_p8 = scmp.ne.s32.totalorder %s2492_s1, %s2067_s25  ;;  %p2074_p12 = scmp.lt.u32.totalorder %s2067_s25, %s2492_s1 }
   0xf   : > { %p2255_p7 = pnand %p1992_p6, %p2235_p1 }
  0x11   : > { %p2069_p9 = pneg %p2255_p7 }
  0x13   : > { %p2070_p10 = pnand %p2069_p9, %p2068_p8 }
  0x15   : > { %p2071_p11 = pneg %p2070_p10 }
  0x17   : > { %p2076_p13 = pnand %p2074_p12, %p2071_p11 }
  0x19   : > { %2079 = shalt.err (!%p2076_p13)
}
  0x1a   : > { %s2080_s30 = scalar_lea.vmem %s134_s20, 256  ;;  %p2088_p6 = scmp.lt.s32.totalorder %s134_s20, %s134_s20 }
  0x1b   : > { %p2081_p0 = scmp.ne.s32.totalorder %s134_s20, %s2080_s30  ;;  %p2089_p1 = scmp.lt.s32.totalorder %s2080_s30, %s2080_s30 }
  0x1d   : > { %p2083_p2 = pnand %p2081_p0, %p2069_p9  ;;  %p2090_p4 = por %p2089_p1, %p2088_p6 }
  0x1f   : > { %p2084_p3 = pneg %p2083_p2 }
  0x21   : > { %p2091_p5 = pnand %p2090_p4, %p2084_p3 }
  0x23   : > { %2094 = shalt.err (!%p2091_p5)
}
  0x24   : > { %s2182_s3 = smov 64   ;;  %s2183_s4 = smov 4  }
  0x25   : > { %1995 = dma.hbm_to_vmem [thread:$0]  (!%p2255_p7), %s2492_s1, 256, %s134_s20, [#allocation5], %s2182_s3, %s2182_s3, %s2183_s4  }
  0x26   : > { %p37_p1 = scmp.ge.s32.totalorder %s35_s22, 2  ;;  %s46_s7 = sadd.s32 1, %s2167_s11 }
  0x27   : > { %p53_p4 = scmp.ne.s32.totalorder %s2167_s11, %s2163_s10  ;;  %p54_p5 = scmp.eq.s32.totalorder %s2179_s14, 0 }
  0x28   : > { %s2512_s22 = smov (%p37_p1, %s35_s22), 0  ;;  %p2001_p9 = scmp.lt.s32.totalorder %s2179_s14, 2 }
  0x29   : > { %p55_p8 = por %p54_p5, %p53_p4  ;;  %s39_s8 = ssub.s32 %s2175_s13, %s2512_s22 }
  0x2a   : > { %s147_s9 = sand.u32 1, %s2167_s11   ;;  %p44_p10 = scmp.eq.s32.totalorder %s39_s8, 0 }
  0x2b   : > { %s1652_s15 = sshll.u32 %s147_s9, 7  ;;  %s1712_s19 = sshll.u32 %s2175_s13, 11 }
  0x2c   : > { %s2288_s23 = scalar_select %p44_p10, %s2167_s11, %s46_s7  }
  0x2d   : > { %s2293_s20 = scalar_lea.hbm %s2491_s0, %s1712_s19  ;;  %s151_s25 = scalar_lea.vmem [#allocation2], %s1652_s15 }
  0x2e   : > { %s163_s26 = sshll.u32 %s151_s25, 4  ;;  %p2295_p7 = pnand %p2001_p9, %p55_p8  ;;  %s2299_s26 = int_to_ptr.vmem [resolvable:$true] %s163_s26 }
  0x2f   : > { %s2301_s28 = scalar_lea.sflag [#allocation3], %s147_s9  ;;  %s2095_s29 = scalar_lea.hbm %s2293_s20, 2048 }
  0x30   : > { %p2096_p11 = scmp.ne.s32.totalorder %s2293_s20, %s2095_s29  ;;  %p2097_p12 = pneg %p2295_p7 }
  0x31   : > { %s2100_s4 = scalar_lea.hbm %s2491_s0, 4096  ;;  %p2101_p2 = scmp.lt.u32.totalorder %s2293_s20, %s2491_s0 }
  0x32   : > { %p2098_p13 = pnand %p2097_p12, %p2096_p11  ;;  %p2102_p3 = scmp.lt.u32.totalorder %s2100_s4, %s2095_s29 }
  0x33   : > { %p2104_p1 = scmp.lt.u32.totalorder %s2095_s29, %s2293_s20 }
  0x34   : > { %p2099_p0 = pneg %p2098_p13  ;;  %p2103_p6 = por %p2102_p3, %p2101_p2 }
  0x36   : > { %p2105_p4 = por %p2104_p1, %p2103_p6 }
  0x38   : > { %p2106_p5 = pnand %p2105_p4, %p2099_p0 }
  0x3a   : > { %2109 = shalt.err (!%p2106_p5)
}
  0x3b   : > { %s2110_s7 = scalar_lea.vmem %s2299_s26, 2048  ;;  %s2184_s8 = smov [#allocation2]  }
  0x3c   : > { %p2111_p8 = scmp.ne.s32.totalorder %s2299_s26, %s2110_s7  ;;  %s2115_s9 = sshll.u32 %s2184_s8, 4  ;;  %s2116_s9 = int_to_ptr.vmem [resolvable:$false] %s2115_s9 }
  0x3d   : > { %s2117_s15 = scalar_lea.vmem %s2116_s9, 4096  ;;  %p2118_p11 = scmp.lt.s32.totalorder %s2299_s26, %s2116_s9 }
  0x3e   : > { %p2113_p9 = pnand %p2111_p8, %p2097_p12  ;;  %p2119_p13 = scmp.lt.s32.totalorder %s2117_s15, %s2110_s7 }
  0x40   : > { %p2114_p10 = pneg %p2113_p9  ;;  %p2120_p2 = por %p2119_p13, %p2118_p11 }
  0x42   : > { %p2121_p3 = pnand %p2120_p2, %p2114_p10 }
  0x44   : > { %2124 = shalt.err (!%p2121_p3)
}
  0x45   : > { %s2185_s19 = smov 128   ;;  %s2186_s21 = smov 8  }
  0x46   : > { %1999 = dma.hbm_to_vmem [thread:$0]  (!%p2295_p7), %s2293_s20, 2048, %s2299_s26, %s2301_s28, %s2185_s19, %s2185_s19, %s2186_s21  }
  0x47   : > { %p2503_p12 = scmp.ne.s32.totalorder %s2500_s18, 0 }
  0x48   : > { %s177_s24 = sand.u32 (!%p2503_p12), 1, %s2163_s10   ;;  %p2504_p0 = scmp.ne.s32.totalorder (!%p2503_p12), %s2499_s17, 0 }
  0x49   : > { %175 = sbr.rel (%p2503_p12) target bundleno = 554 (0x22a), region = 28  ;;  %s1656_s25 = sshll.u32 (!%p2503_p12), %s177_s24, 7 }
  0x4a   : > { %s178_s29 = scalar_lea.sflag (!%p2503_p12), [#allocation3], %s177_s24  ;;  %s2332_s30 = scalar_lea.vmem (!%p2503_p12), [#allocation2], %s1656_s25 }
  0x50   : > { %2150 = dma.done.wait (%p2504_p0), %s178_s29, 2048  }
  0x51   : > { %2152 = vsyncadd (%p2504_p0), %s178_s29, 4294965248  ;;  %p2505_p6 = scmp.ne.s32.totalorder %s2498_s16, 0 }
  0x53   : > { %2154 = dma.done.wait (%p2505_p6), [#allocation5], 256  }
  0x54   : > { %2156 = vsyncadd (%p2505_p6), [#allocation5], 4294967040  ;;  %v2187_v0 = vmov 0.0   ;;  %vm2188_vm0 = vmmov 0   ;;  %v2059_v1 = vld [vmem:[#allocation4] sm:$0xff]   ;;  %v1671_v3 = vld [vmem:[%s2332_s30 + $0x28] sm:$0xff] }
  0x55   : > { %1798 = vmatprep.subr.bf16.mxu1 %v2187_v0  ;;  %1800 = vmatprep.mubr.msk.bf16.mxu1 %vm2188_vm0, %v2187_v0  ;;  %v1670_v2 = vld [vmem:[%s2332_s30 + $0x20] sm:$0xff]  ;;  %v235_v9 = vld [vmem:[%s2332_s30 + $0x8] sm:$0xff]  ;;  %vm255_vm1 = vcmask 130048   ;;  %v1676_v25 = vld [vmem:[%s2332_s30 + $0x30] sm:$0xff]  ;;  %p219_p7 = scmp.lt.s32.totalorder %s2171_s12, 1  ;;  %s2189_s17 = smov 32  }
  0x56   : > { %1762 = vmatprep.subr.bf16.mxu0 %v2187_v0  ;;  %1764 = vmatprep.mubr.msk.bf16.mxu0 %vm2188_vm0, %v2187_v0  ;;  %v557_v4 = vpack.c.bf16 %v1671_v3, %v1670_v2  ;;  %v2061_v7 = vld [vmem:[#allocation4] sm:$0xff]   ;;  %v1677_v26 = vld [vmem:[%s2332_s30 + $0x38] sm:$0xff]  ;;  %v1664_v31 = vld [vmem:[%s2332_s30 + $0x10] sm:$0xff]  ;;  %vm549_vm2 = vcmask 261120   ;;  %vm874_vm3 = vcmask 523520  }
  0x57   : > { %1799 = vmatpush3.bf16.msra.mxu1 %v2059_v1  ;;  %v234_v8 = vld [vmem:[%s2332_s30] sm:$0xff]  ;;  %1763 = vmatpush3.bf16.msra.mxu0 %v2061_v7  ;;  %v713_v30 = vpack.c.bf16 %v1677_v26, %v1676_v25  ;;  %v1665_v32 = vld [vmem:[%s2332_s30 + $0x18] sm:$0xff]  ;;  %v2060_v33 = vld [vmem:[#allocation4 + $0x8] sm:$0xff]   ;;  %s2514_s12 = smov (!%p219_p7, %s2171_s12), 1 }
  0x58   : > { %1804 = vmatprep.subr.bf16.mxu1 %v2187_v0  ;;  %v558_v5 = vunpack.c.l.bf16 %v557_v4  ;;  %v559_v6 = vunpack.c.h.bf16 %v557_v4  ;;  %v238_v10 = vpack.c.bf16 %v235_v9, %v234_v8  ;;  %1768 = vmatprep.subr.bf16.mxu0 %v2187_v0  ;;  %v396_v35 = vpack.c.bf16 %v1665_v32, %v1664_v31  ;;  %v2063_v38 = vld [vmem:[#allocation4 + $0x8] sm:$0xff]   ;;  %v1696_v49 = vld [vmem:[%s2332_s30 + $0x60] sm:$0xff]  ;;  %s1713_s16 = sshll.u32 %s2514_s12, 5 }
  0x59   : > { %v714_v36 = vunpack.c.l.bf16 %v713_v30  ;;  %v715_v37 = vunpack.c.h.bf16 %v713_v30  ;;  %v1697_v50 = vld [vmem:[%s2332_s30 + $0x68] sm:$0xff]  ;;  %v1682_v56 = vld [vmem:[%s2332_s30 + $0x40] sm:$0xff]  ;;  %s2459_s26 = scalar_lea.vmem %s2493_s2, %s1713_s16 }
  0x5a   : > { %v560_v11 = vsub.f32 %v1670_v2, %v558_v5  ;;  %v561_v12 = vsub.f32 %v1671_v3, %v559_v6  ;;  %v239_v13 = vunpack.c.l.bf16 %v238_v10  ;;  %v240_v14 = vunpack.c.h.bf16 %v238_v10  ;;  %v1683_v57 = vld [vmem:[%s2332_s30 + $0x48] sm:$0xff] }
  0x5b   : > { %v397_v39 = vunpack.c.l.bf16 %v396_v35  ;;  %v398_v40 = vunpack.c.h.bf16 %v396_v35  ;;  %v716_v41 = vsub.f32 %v1676_v25, %v714_v36  ;;  %v717_v42 = vsub.f32 %v1677_v26, %v715_v37  ;;  %v1689_v25 = vld [vmem:[%s2332_s30 + $0x58] sm:$0xff]  ;;  %v2064_v26 = vld [vmem:[#allocation4 + $0x8] sm:$0xff]  }
  0x5c   : > { %v562_v15 = vpack.c.bf16 %v561_v12, %v560_v11  ;;  %v241_v16 = vsub.f32 %v234_v8, %v239_v13  ;;  %v242_v17 = vsub.f32 %v235_v9, %v240_v14  ;;  %v1199_v55 = vpack.c.bf16 %v1697_v50, %v1696_v49 }
  0x5d   : > { %v399_v43 = vsub.f32 %v1664_v31, %v397_v39  ;;  %v400_v44 = vsub.f32 %v1665_v32, %v398_v40  ;;  %v718_v45 = vpack.c.bf16 %v717_v42, %v716_v41  ;;  %v882_v60 = vpack.c.bf16 %v1683_v57, %v1682_v56  ;;  %v2066_v31 = vld [vmem:[#allocation4 + $0x8] sm:$0xff]  }
  0x5e   : > { %1801 = vmatmul.mubr.msk.bf16.vlgmr.msra.gmra.mrb[0].mxu1 %vm255_vm1, %v562_v15  ;;  %v243_v18 = vpack.c.bf16 %v242_v17, %v241_v16  ;;  %v563_v19 = vunpack.c.l.bf16 %v562_v15  ;;  %v564_v20 = vunpack.c.h.bf16 %v562_v15  ;;  %v1200_v62 = vunpack.c.l.bf16 %v1199_v55 }
  0x5f   : > { %1805 = vmatpush3.bf16.msra.mxu1 %v2059_v1  ;;  %1806 = vmatprep.mubr.msk.bf16.mxu1 %vm2188_vm0, %v2187_v0  ;;  %v401_v46 = vpack.c.bf16 %v400_v44, %v399_v43  ;;  %v719_v47 = vunpack.c.l.bf16 %v718_v45  ;;  %v720_v48 = vunpack.c.h.bf16 %v718_v45  ;;  %v1201_v63 = vunpack.c.h.bf16 %v1199_v55 }
  0x60   : > { %1810 = vmatprep.subr.bf16.mxu1 %v2187_v0  ;;  %1765 = vmatmul.mubr.msk.bf16.vlgmr.msra.gmra.mrb[0].mxu0 %vm255_vm1, %v243_v18  ;;  %v244_v21 = vunpack.c.l.bf16 %v243_v18  ;;  %v245_v22 = vunpack.c.h.bf16 %v243_v18  ;;  %v565_v23 = vsub.f32 %v560_v11, %v563_v19  ;;  %v566_v24 = vsub.f32 %v561_v12, %v564_v20  ;;  %v1702_v18 = vld [vmem:[%s2332_s30 + $0x70] sm:$0xff]  ;;  %v1703_v19 = vld [vmem:[%s2332_s30 + $0x78] sm:$0xff] }
  0x61   : > { %1769 = vmatpush3.bf16.msra.mxu0 %v2061_v7  ;;  %1770 = vmatprep.mubr.msk.bf16.mxu0 %vm2188_vm0, %v2187_v0  ;;  %v402_v51 = vunpack.c.l.bf16 %v401_v46  ;;  %v403_v52 = vunpack.c.h.bf16 %v401_v46  ;;  %v721_v53 = vsub.f32 %v716_v41, %v719_v47  ;;  %v722_v54 = vsub.f32 %v717_v42, %v720_v48 }
  0x62   : > { %1774 = vmatprep.subr.bf16.mxu0 %v2187_v0  ;;  %v246_v27 = vsub.f32 %v241_v16, %v244_v21  ;;  %v247_v28 = vsub.f32 %v242_v17, %v245_v22  ;;  %v567_v29 = vpack.c.bf16 %v566_v24, %v565_v23  ;;  %v883_v3 = vunpack.c.l.bf16 %v882_v60  ;;  %v1688_v24 = vld [vmem:[%s2332_s30 + $0x50] sm:$0xff] }
  0x63   : > { %v404_v58 = vsub.f32 %v399_v43, %v402_v51  ;;  %v405_v59 = vsub.f32 %v400_v44, %v403_v52  ;;  %v723_v61 = vpack.c.bf16 %v722_v54, %v721_v53  ;;  %v1202_v5 = vsub.f32 %v1696_v49, %v1200_v62 }
  0x64   : > { %v248_v34 = vpack.c.bf16 %v247_v28, %v246_v27  ;;  %v1203_v6 = vsub.f32 %v1697_v50, %v1201_v63  ;;  %v885_v8 = vsub.f32 %v1682_v56, %v883_v3  ;;  %v1355_v23 = vpack.c.bf16 %v1703_v19, %v1702_v18 }
  0x65   : > { %v406_v2 = vpack.c.bf16 %v405_v59, %v404_v58  ;;  %v1038_v28 = vpack.c.bf16 %v1689_v25, %v1688_v24 }
  0x67   : > { %v1039_v32 = vunpack.c.l.bf16 %v1038_v28 }
  0x69   : > { %v1041_v36 = vsub.f32 %v1688_v24, %v1039_v32 }
  0x6a   : > { %1807 = vmatmul.mubr.msk.bf16.vlgmr.msra.gmra.mrb[0].mxu1 %vm255_vm1, %v557_v4  ;;  %v884_v4 = vunpack.c.h.bf16 %v882_v60 }
  0x6b   : > { %1811 = vmatpush3.bf16.msra.mxu1 %v2059_v1  ;;  %1812 = vmatprep.mubr.msk.bf16.mxu1 %vm2188_vm0, %v2187_v0  ;;  %v2062_v1 = vld [vmem:[#allocation4] sm:$0xff]  }
  0x6c   : > { %1816 = vmatprep.subr.bf16.mxu1 %v2187_v0  ;;  %1771 = vmatmul.mubr.msk.bf16.vlgmr.msra.gmra.mrb[0].mxu0 %vm255_vm1, %v238_v10  ;;  %v886_v9 = vsub.f32 %v1683_v57, %v884_v4  ;;  %v1204_v10 = vpack.c.bf16 %v1203_v6, %v1202_v5 }
  0x6d   : > { %1775 = vmatpush3.bf16.msra.mxu0 %v2061_v7  ;;  %1776 = vmatprep.mubr.msk.bf16.mxu0 %vm2188_vm0, %v2187_v0  ;;  %v2065_v7 = vld [vmem:[#allocation4] sm:$0xff]  }
  0x6e   : > { %1780 = vmatprep.subr.bf16.mxu0 %v2187_v0  ;;  %v887_v11 = vpack.c.bf16 %v886_v9, %v885_v8  ;;  %v1205_v12 = vunpack.c.l.bf16 %v1204_v10  ;;  %v1206_v13 = vunpack.c.h.bf16 %v1204_v10 }
  0x70   : > { %v888_v14 = vunpack.c.l.bf16 %v887_v11  ;;  %v889_v15 = vunpack.c.h.bf16 %v887_v11  ;;  %v1207_v16 = vsub.f32 %v1202_v5, %v1205_v12  ;;  %v1208_v17 = vsub.f32 %v1203_v6, %v1206_v13 }
  0x72   : > { %v890_v20 = vsub.f32 %v885_v8, %v888_v14  ;;  %v891_v21 = vsub.f32 %v886_v9, %v889_v15  ;;  %v1209_v22 = vpack.c.bf16 %v1208_v17, %v1207_v16 }
  0x74   : > { %v892_v27 = vpack.c.bf16 %v891_v21, %v890_v20 }
  0x76   : > { %1813 = vmatmul.mubr.msk.bf16.vlgmr.msra.gmra.mrb[0].mxu1 %vm255_vm1, %v567_v29  ;;  %v1356_v29 = vunpack.c.l.bf16 %v1355_v23 }
  0x77   : > { %1817 = vmatpush3.bf16.msra.mxu1 %v2060_v33  ;;  %1818 = vmatprep.mubr.msk.bf16.mxu1 %vm2188_vm0, %v2187_v0 }
  0x78   : > { %1822 = vmatprep.subr.bf16.mxu1 %v2187_v0  ;;  %1777 = vmatmul.mubr.msk.bf16.vlgmr.msra.gmra.mrb[0].mxu0 %vm255_vm1, %v248_v34  ;;  %v1358_v34 = vsub.f32 %v1702_v18, %v1356_v29 }
  0x79   : > { %1781 = vmatpush3.bf16.msra.mxu0 %v2063_v38  ;;  %1782 = vmatprep.mubr.msk.bf16.mxu0 %vm2188_vm0, %v2187_v0 }
  0x7a   : > { %1786 = vmatprep.subr.bf16.mxu0 %v2187_v0 }
  0x82   : > { %1819 = vmatmul.mubr.msk.bf16.vlgmr.msra.gmra.mrb[0].mxu1 %vm255_vm1, %v718_v45 }
  0x83   : > { %1823 = vmatpush3.bf16.msra.mxu1 %v2060_v33  ;;  %1824 = vmatprep.mubr.msk.bf16.mxu1 %vm2188_vm0, %v2187_v0 }
  0x84   : > { %1828 = vmatprep.subr.bf16.mxu1 %v2187_v0  ;;  %1783 = vmatmul.mubr.msk.bf16.vlgmr.msra.gmra.mrb[0].mxu0 %vm255_vm1, %v401_v46 }
  0x85   : > { %1787 = vmatpush3.bf16.msra.mxu0 %v2063_v38  ;;  %1788 = vmatprep.mubr.msk.bf16.mxu0 %vm2188_vm0, %v2187_v0 }
  0x86   : > { %1792 = vmatprep.subr.bf16.mxu0 %v2187_v0 }
  0x8e   : > { %1825 = vmatmul.mubr.msk.bf16.vlgmr.msra.gmra.mrb[0].mxu1 %vm255_vm1, %v713_v30  ;;  %v1357_v30 = vunpack.c.h.bf16 %v1355_v23 }
  0x8f   : > { %1829 = vmatpush3.bf16.msra.mxu1 %v2060_v33  ;;  %1830 = vmatprep.mubr.msk.bf16.mxu1 %vm2188_vm0, %v2187_v0  ;;  %v1040_v33 = vunpack.c.h.bf16 %v1038_v28 }
  0x90   : > { %1870 = vmatprep.subr.bf16.mxu1 %v2187_v0  ;;  %1789 = vmatmul.mubr.msk.bf16.vlgmr.msra.gmra.mrb[0].mxu0 %vm255_vm1, %v396_v35  ;;  %v1359_v35 = vsub.f32 %v1703_v19, %v1357_v30 }
  0x91   : > { %1793 = vmatpush3.bf16.msra.mxu0 %v2063_v38  ;;  %1794 = vmatprep.mubr.msk.bf16.mxu0 %vm2188_vm0, %v2187_v0  ;;  %v1042_v37 = vsub.f32 %v1689_v25, %v1040_v33 }
  0x92   : > { %1834 = vmatprep.subr.bf16.mxu0 %v2187_v0  ;;  %v1360_v38 = vpack.c.bf16 %v1359_v35, %v1358_v34 }
  0x93   : > { %v1043_v39 = vpack.c.bf16 %v1042_v37, %v1041_v36 }
  0x94   : > { %v1361_v40 = vunpack.c.l.bf16 %v1360_v38  ;;  %v1362_v41 = vunpack.c.h.bf16 %v1360_v38 }
  0x95   : > { %v1044_v42 = vunpack.c.l.bf16 %v1043_v39  ;;  %v1045_v43 = vunpack.c.h.bf16 %v1043_v39 }
  0x96   : > { %v1363_v44 = vsub.f32 %v1358_v34, %v1361_v40  ;;  %v1364_v45 = vsub.f32 %v1359_v35, %v1362_v41 }
  0x97   : > { %v1046_v46 = vsub.f32 %v1041_v36, %v1044_v42  ;;  %v1047_v47 = vsub.f32 %v1042_v37, %v1045_v43 }
  0x98   : > { %v1365_v48 = vpack.c.bf16 %v1364_v45, %v1363_v44 }
  0x99   : > { %v1048_v49 = vpack.c.bf16 %v1047_v47, %v1046_v46 }
  0x9a   : > { %1831 = vmatmul.mubr.msk.bf16.vlgmr.msra.gmra.mrb[0].mxu1 %vm255_vm1, %v723_v61 }
  0x9b   : > { %1871 = vmatpush3.bf16.msra.mxu1 %v2062_v1  ;;  %1872 = vmatprep.mubr.msk.bf16.mxu1 %vm2188_vm0, %v2187_v0 }
  0x9c   : > { %1876 = vmatprep.subr.bf16.mxu1 %v2187_v0  ;;  %1795 = vmatmul.mubr.msk.bf16.vlgmr.msra.gmra.mrb[0].mxu0 %vm255_vm1, %v406_v2 }
  0x9d   : > { %1835 = vmatpush3.bf16.msra.mxu0 %v2065_v7  ;;  %1836 = vmatprep.mubr.msk.bf16.mxu0 %vm2188_vm0, %v2187_v0 }
  0x9e   : > { %1840 = vmatprep.subr.bf16.mxu0 %v2187_v0 }
  0xa2   : > { %1873 = vmatmul.mubr.msk.bf16.vlgmr.msra.gmra.mrb[4].mxu1 %vm255_vm1, %v1204_v10 }
  0xa3   : > { %1877 = vmatpush3.bf16.msra.mxu1 %v2062_v1  ;;  %1878 = vmatprep.mubr.msk.bf16.mxu1 %vm2188_vm0, %v2187_v0 }
  0xa4   : > { %1882 = vmatprep.subr.bf16.mxu1 %v2187_v0  ;;  %1837 = vmatmul.mubr.msk.bf16.vlgmr.msra.gmra.mrb[4].mxu0 %vm255_vm1, %v887_v11 }
  0xa5   : > { %1841 = vmatpush3.bf16.msra.mxu0 %v2065_v7  ;;  %1842 = vmatprep.mubr.msk.bf16.mxu0 %vm2188_vm0, %v2187_v0 }
  0xa6   : > { %1846 = vmatprep.subr.bf16.mxu0 %v2187_v0 }
  0xae   : > { %1879 = vmatmul.mubr.msk.bf16.vlgmr.msra.gmra.mrb[4].mxu1 %vm255_vm1, %v1199_v55 }
  0xaf   : > { %1883 = vmatpush3.bf16.msra.mxu1 %v2062_v1  ;;  %1884 = vmatprep.mubr.msk.bf16.mxu1 %vm2188_vm0, %v2187_v0 }
  0xb0   : > { %1888 = vmatprep.subr.bf16.mxu1 %v2187_v0  ;;  %1843 = vmatmul.mubr.msk.bf16.vlgmr.msra.gmra.mrb[4].mxu0 %vm255_vm1, %v882_v60 }
  0xb1   : > { %1847 = vmatpush3.bf16.msra.mxu0 %v2065_v7  ;;  %1848 = vmatprep.mubr.msk.bf16.mxu0 %vm2188_vm0, %v2187_v0 }
  0xb2   : > { %1852 = vmatprep.subr.bf16.mxu0 %v2187_v0 }
  0xba   : > { %1885 = vmatmul.mubr.msk.bf16.vlgmr.msra.gmra.mrb[4].mxu1 %vm255_vm1, %v1209_v22 }
  0xbb   : > { %1889 = vmatpush3.bf16.msra.mxu1 %v2064_v26  ;;  %1890 = vmatprep.mubr.msk.bf16.mxu1 %vm2188_vm0, %v2187_v0 }
  0xbc   : > { %1894 = vmatprep.subr.bf16.mxu1 %v2187_v0  ;;  %1849 = vmatmul.mubr.msk.bf16.vlgmr.msra.gmra.mrb[4].mxu0 %vm255_vm1, %v892_v27 }
  0xbd   : > { %1853 = vmatpush3.bf16.msra.mxu0 %v2066_v31  ;;  %1854 = vmatprep.mubr.msk.bf16.mxu0 %vm2188_vm0, %v2187_v0 }
  0xbe   : > { %1858 = vmatprep.subr.bf16.mxu0 %v2187_v0 }
  0xc6   : > { %1891 = vmatmul.mubr.msk.bf16.vlgmr.msra.gmra.mrb[4].mxu1 %vm255_vm1, %v1360_v38 }
  0xc7   : > { %1895 = vmatpush3.bf16.msra.mxu1 %v2064_v26  ;;  %1896 = vmatprep.mubr.msk.bf16.mxu1 %vm2188_vm0, %v2187_v0 }
  0xc8   : > { %1900 = vmatprep.subr.bf16.mxu1 %v2187_v0  ;;  %1855 = vmatmul.mubr.msk.bf16.vlgmr.msra.gmra.mrb[4].mxu0 %vm255_vm1, %v1043_v39 }
  0xc9   : > { %1859 = vmatpush3.bf16.msra.mxu0 %v2066_v31  ;;  %1860 = vmatprep.mubr.msk.bf16.mxu0 %vm2188_vm0, %v2187_v0 }
  0xca   : > { %1864 = vmatprep.subr.bf16.mxu0 %v2187_v0 }
  0xd2   : > { %1897 = vmatmul.mubr.msk.bf16.vlgmr.msra.gmra.mrb[4].mxu1 %vm255_vm1, %v1355_v23 }
  0xd3   : > { %1901 = vmatpush3.bf16.msra.mxu1 %v2064_v26  ;;  %1902 = vmatprep.mubr.msk.bf16.mxu1 %vm2188_vm0, %v2187_v0 }
  0xd4   : > { %1861 = vmatmul.mubr.msk.bf16.vlgmr.msra.gmra.mrb[4].mxu0 %vm255_vm1, %v1038_v28 }
  0xd5   : > { %1865 = vmatpush3.bf16.msra.mxu0 %v2066_v31  ;;  %1866 = vmatprep.mubr.msk.bf16.mxu0 %vm2188_vm0, %v2187_v0 }
  0xde   : > { %1903 = vmatmul.mubr.msk.bf16.vlgmr.msra.gmra.mrb[4].mxu1 %vm255_vm1, %v1365_v48 }
  0xe0   : > { %1867 = vmatmul.mubr.msk.bf16.vlgmr.msra.gmra.mrb[4].mxu0 %vm255_vm1, %v1048_v49 }
 0x16d   : > { %v855_v50 = vpop.f32.mrb[0].mxu1 }
 0x16e   : > { %868 = vrot.lane.b32.xlu0 %v855_v50, %s2189_s17  ;;  %v1832_v51 = vpop.f32.mrb[1].mxu1 }
 0x16f   : > { %v858_v0 = vpop.f32.mrb[2].mxu1  ;;  %v538_v53 = vpop.f32.mrb[0].mxu0 }
 0x170   : > { %v1833_v52 = vpop.f32.mrb[3].mxu1  ;;  %550 = vst.msk [vmem:[%s2459_s26] sm:$0xff] %vm549_vm2, %v538_v53  ;;  %v1796_v54 = vpop.f32.mrb[1].mxu0 }
 0x171   : > { %v541_v55 = vpop.f32.mrb[2].mxu0 }
 0x172   : > { %870 = vrot.lane.b32.xlu0 %v858_v0, %s2189_s17  ;;  %551 = vst.msk [vmem:[%s2459_s26 + $0x8] sm:$0xff] %vm549_vm2, %v541_v55  ;;  %v1797_v56 = vpop.f32.mrb[3].mxu0 }
 0x1b1   : > { %v1497_v57 = vpop.f32.mrb[4].mxu1 }
 0x1b2   : > { %1510 = vrot.lane.b32.xlu1 %v1497_v57, %s2189_s17  ;;  %v1904_v58 = vpop.f32.mrb[5].mxu1 }
 0x1b3   : > { %v1500_v59 = vpop.f32.mrb[6].mxu1  ;;  %v1180_v61 = vpop.f32.mrb[4].mxu0 }
 0x1b4   : > { %v1905_v60 = vpop.f32.mrb[7].mxu1  ;;  %1694 = vst.msk [vmem:[%s2459_s26 + $0x10] sm:$0xff] %vm549_vm2, %v1180_v61  ;;  %v1868_v62 = vpop.f32.mrb[5].mxu0 }
 0x1b5   : > { %v1183_v63 = vpop.f32.mrb[6].mxu0 }
 0x1b6   : > { %1512 = vrot.lane.b32.xlu1 %v1500_v59, %s2189_s17  ;;  %1695 = vst.msk [vmem:[%s2459_s26 + $0x18] sm:$0xff] %vm549_vm2, %v1183_v63  ;;  %v1869_v1 = vpop.f32.mrb[7].mxu0 }
 0x1e0   : > { %v869_v2 = vpop.permute.xlu0 %868 }
 0x1e1   : > { %875 = vst.msk [vmem:[%s2459_s26] sm:$0xff] %vm874_vm3, %v869_v2 }
 0x1e4   : > { %v871_v3 = vpop.permute.xlu0 %870 }
 0x1e5   : > { %876 = vst.msk [vmem:[%s2459_s26 + $0x8] sm:$0xff] %vm874_vm3, %v871_v3 }
 0x224   : > { %v1511_v4 = vpop.permute.xlu1 %1510 }
 0x225   : > { %1708 = vst.msk [vmem:[%s2459_s26 + $0x10] sm:$0xff] %vm874_vm3, %v1511_v4 }
 0x228   : > { %v1513_v5 = vpop.permute.xlu1 %1512 }
 0x229   : > { %1709 = vst.msk [vmem:[%s2459_s26 + $0x18] sm:$0xff] %vm874_vm3, %v1513_v5 }
 0x22a PF: > { %s16_s14 = sadd.s32 1, %s2179_s14   ;;  %s2506_s9 = smov %s2163_s10 }
 0x22b   : > { %p13_p1 = scmp.ge.s32.totalorder %s16_s14, 4   ;;  %s2507_s10 = smov %s2167_s11 }
 0x22c   : > { %s2508_s11 = smov %s2288_s23  ;;  %s2509_s12 = smov %s2175_s13 }
 0x22d   : > { %s2510_s13 = smov %s2512_s22  ;;  %15 = sbr.rel (!%p13_p1) target bundleno = 5 (0x5), region = 81 }
 0x234   :  { %1559 = vsyncpa [#allocation3], 1 }
 0x235   :  { %1561 = vsyncpa [#allocation3 + $0x1], 1 }
 0x236   :  { %1562 = vsyncpa [#allocation5], 1 }

</bundles_post_ra>
